<compile_context>
chip_gen: v7x
topology: tpu7x:2x2x1
jax: 0.10.0
libtpu: 0.0.40
codegen_flags: <defaults>
</compile_context>

<pallas_src>
import jax
import jax.numpy as jnp
from jax.experimental import pallas as pl
from jax.experimental.pallas import tpu as pltpu

LANE = 128


def _round_up(d, m=LANE):
    return ((d + m - 1) // m) * m


def _pad_last(x, target):
    pad = target - x.shape[-1]
    if pad <= 0:
        return x
    widths = [(0, 0)] * (x.ndim - 1) + [(0, pad)]
    return jnp.pad(x, widths)


def _pad_axis0(x, target):
    pad = target - x.shape[0]
    if pad <= 0:
        return x
    widths = [(0, pad)] + [(0, 0)] * (x.ndim - 1)
    return jnp.pad(x, widths)


# ----------------------------- Pallas kernel ------------------------------

def _fused_gcn_kernel(a_ref, x_ref, w1_ref, b1_ref, w2_ref, b2_ref, o_ref):
    """out = A_hat @ relu((A_hat @ X) @ W1 + b1) @ W2 + b2.

    All operands are full blocks in VMEM (small graph). Matmul inputs are
    bf16, accumulation is f32 on the MXU; bias/ReLU epilogue is f32 (VPU).
    """
    a = a_ref[...]                                               # (N, N) bf16

    # ---- layer 1: (A @ X) @ W1 + b1, ReLU -------------------------------
    ax = jnp.dot(a, x_ref[...], preferred_element_type=jnp.float32)
    h = jnp.dot(ax.astype(jnp.bfloat16), w1_ref[...],
                preferred_element_type=jnp.float32)
    h = jnp.maximum(h + b1_ref[...], 0.0)                        # f32 epilogue

    # ---- layer 2: A @ (h @ W2) + b2 -------------------------------------
    hw = jnp.dot(h.astype(jnp.bfloat16), w2_ref[...],
                 preferred_element_type=jnp.float32)
    y = jnp.dot(a, hw.astype(jnp.bfloat16),
                preferred_element_type=jnp.float32)
    o_ref[...] = (y + b2_ref[...]).astype(o_ref.dtype)


def fused_gcn(a_hat, x, w1, b1, w2, b2):
    """Pad lane dims to 128, cast MXU operands to bf16, run fused kernel."""
    n = x.shape[0]
    f_in_p = _round_up(x.shape[1])
    hid_p = _round_up(w1.shape[1])
    out_dim = w2.shape[1]
    out_p = _round_up(out_dim)

    a_bf = a_hat.astype(jnp.bfloat16)
    x_p = _pad_last(x, f_in_p).astype(jnp.bfloat16)
    w1_p = _pad_last(_pad_axis0(w1, f_in_p), hid_p).astype(jnp.bfloat16)
    b1_p = _pad_last(b1, hid_p).astype(jnp.float32)
    w2_p = _pad_last(_pad_axis0(w2, hid_p), out_p).astype(jnp.bfloat16)
    b2_p = _pad_last(b2, out_p).astype(jnp.float32)

    vmem = pltpu.MemorySpace.VMEM
    out_pad = pl.pallas_call(
        _fused_gcn_kernel,
        out_shape=jax.ShapeDtypeStruct((n, out_p), jnp.float32),
        in_specs=[
            pl.BlockSpec(memory_space=vmem),  # A_hat (N, N)        bf16
            pl.BlockSpec(memory_space=vmem),  # X     (N, 128)      bf16
            pl.BlockSpec(memory_space=vmem),  # W1    (128, 128)    bf16
            pl.BlockSpec(memory_space=vmem),  # b1    (1, 128)      f32
            pl.BlockSpec(memory_space=vmem),  # W2    (128, 128)    bf16
            pl.BlockSpec(memory_space=vmem),  # b2    (1, 128)      f32
        ],
        out_specs=pl.BlockSpec(memory_space=vmem),
    )(a_bf, x_p, w1_p, b1_p, w2_p, b2_p)

    return out_pad[:, :out_dim]


# ------------------------------- JAX glue ---------------------------------

def normalized_adjacency(edge_index, num_nodes):
    """Dense A_hat = D^{-1/2} (A + I) D^{-1/2}, matching PyG gcn_norm."""
    src = edge_index[0]
    dst = edge_index[1]
    a = jnp.zeros((num_nodes, num_nodes), dtype=jnp.float32)
    a = a.at[dst, src].add(1.0)                      # rows=target, cols=source
    a = a + jnp.eye(num_nodes, dtype=jnp.float32)    # self-loops
    deg = a.sum(axis=1)
    d_inv_sqrt = jnp.where(deg > 0, 1.0 / jnp.sqrt(deg), 0.0)
    return d_inv_sqrt[:, None] * a * d_inv_sqrt[None, :]


def init_gcn_params(key, in_dim, hidden_dim, out_dim):
    """Deterministic glorot-style init for the two GCNConv layers."""
    k1, k2 = jax.random.split(key)

    def glorot(k, fan_in, fan_out):
        limit = jnp.sqrt(6.0 / (fan_in + fan_out))
        return jax.random.uniform(
            k, (fan_in, fan_out), jnp.float32, -limit, limit)

    return {
        "w1": glorot(k1, in_dim, hidden_dim),
        "b1": jnp.zeros((1, hidden_dim), jnp.float32),
        "w2": glorot(k2, hidden_dim, out_dim),
        "b2": jnp.zeros((1, out_dim), jnp.float32),
    }


@jax.jit
def simple_gcn_forward(params, x, a_hat):
    return fused_gcn(a_hat, x, params["w1"], params["b1"],
                     params["w2"], params["b2"])


# ------------------------------ references --------------------------------

def simple_gcn_reference_f32(params, x, a_hat):
    h = jnp.maximum(a_hat @ (x @ params["w1"]) + params["b1"], 0.0)
    return a_hat @ (h @ params["w2"]) + params["b2"]


def simple_gcn_reference_matched(params, x, a_hat):
    """Same bf16-in / f32-acc precision and contraction order as the kernel."""
    a = a_hat.astype(jnp.bfloat16)
    xb = x.astype(jnp.bfloat16)
    w1 = params["w1"].astype(jnp.bfloat16)
    w2 = params["w2"].astype(jnp.bfloat16)
    ax = jnp.dot(a, xb, preferred_element_type=jnp.float32)
    h = jnp.dot(ax.astype(jnp.bfloat16), w1,
                preferred_element_type=jnp.float32)
    h = jnp.maximum(h + params["b1"], 0.0)
    hw = jnp.dot(h.astype(jnp.bfloat16), w2,
                 preferred_element_type=jnp.float32)
    return jnp.dot(a, hw.astype(jnp.bfloat16),
                   preferred_element_type=jnp.float32) + params["b2"]


# --------------------------------- main ------------------------------------

if __name__ == "__main__":
    key = jax.random.PRNGKey(0)
    k_x, k_e, k_p = jax.random.split(key, 3)

    num_nodes = 32
    num_edges = 64
    in_dim, hidden_dim, out_dim = 16, 32, 8

    x = jax.random.normal(k_x, (num_nodes, in_dim), dtype=jnp.float32)
    edge_index = jax.random.randint(
        k_e, (2, num_edges), 0, num_nodes, dtype=jnp.int32)

    params = init_gcn_params(k_p, in_dim, hidden_dim, out_dim)
    a_hat = normalized_adjacency(edge_index, num_nodes)

    out = simple_gcn_forward(params, x, a_hat)
    out = jax.block_until_ready(out)
    assert out.shape == (num_nodes, out_dim)

    # Precision-matched reference (same bf16/f32 mixed precision as kernel).
    ref_matched = simple_gcn_reference_matched(params, x, a_hat)
    assert jnp.allclose(out, ref_matched, atol=5e-3, rtol=5e-3)

    # Loose sanity check against the pure-f32 reference semantics.
    ref_f32 = simple_gcn_reference_f32(params, x, a_hat)
    assert jnp.allclose(out, ref_f32, atol=0.2, rtol=0.1)

    print("KERNEL_OK")
</pallas_src>

<mosaic_0001>
module attributes {stable_mosaic.version = 11 : i64} {
  func.func @_fused_gcn_kernel(%arg0: memref<32x32xbf16, #tpu.memory_space<vmem>>, %arg1: memref<32x128xbf16, #tpu.memory_space<vmem>>, %arg2: memref<128x128xbf16, #tpu.memory_space<vmem>>, %arg3: memref<1x128xf32, #tpu.memory_space<vmem>>, %arg4: memref<128x128xbf16, #tpu.memory_space<vmem>>, %arg5: memref<1x128xf32, #tpu.memory_space<vmem>>, %arg6: memref<32x128xf32, #tpu.memory_space<vmem>>) attributes {dimension_semantics = [], scalar_prefetch = 0 : i64, scratch_operands = 0 : i64, tpu.core_type = #tpu.core_type<tc>} {
    %c0 = arith.constant 0 : index
    %c0_0 = arith.constant 0 : index
    %0 = vector.load %arg0[%c0, %c0_0] : memref<32x32xbf16, #tpu.memory_space<vmem>>, vector<32x32xbf16>
    %c0_1 = arith.constant 0 : index
    %c0_2 = arith.constant 0 : index
    %1 = vector.load %arg1[%c0_1, %c0_2] : memref<32x128xbf16, #tpu.memory_space<vmem>>, vector<32x128xbf16>
    %cst = arith.constant dense<0.000000e+00> : vector<32x128xf32>
    %2 = tpu.matmul %0, %1, %cst {dimension_numbers = #tpu.dot_dimension_numbers<[1], [0], [0], [1], [0, 0, 1, 1], [], []>} : vector<32x32xbf16>, vector<32x128xbf16>, vector<32x128xf32> -> vector<32x128xf32>
    %3 = arith.truncf %2 : vector<32x128xf32> to vector<32x128xbf16>
    %c0_3 = arith.constant 0 : index
    %c0_4 = arith.constant 0 : index
    %4 = vector.load %arg2[%c0_3, %c0_4] : memref<128x128xbf16, #tpu.memory_space<vmem>>, vector<128x128xbf16>
    %cst_5 = arith.constant dense<0.000000e+00> : vector<32x128xf32>
    %5 = tpu.matmul %3, %4, %cst_5 {dimension_numbers = #tpu.dot_dimension_numbers<[1], [0], [0], [1], [0, 0, 1, 1], [], []>} : vector<32x128xbf16>, vector<128x128xbf16>, vector<32x128xf32> -> vector<32x128xf32>
    %c0_6 = arith.constant 0 : index
    %c0_7 = arith.constant 0 : index
    %6 = vector.load %arg3[%c0_6, %c0_7] : memref<1x128xf32, #tpu.memory_space<vmem>>, vector<1x128xf32>
    %7 = vector.broadcast %6 : vector<1x128xf32> to vector<32x128xf32>
    %8 = arith.addf %5, %7 : vector<32x128xf32>
    %cst_8 = arith.constant 0.000000e+00 : f32
    %9 = vector.broadcast %cst_8 : f32 to vector<32x128xf32>
    %10 = arith.maximumf %8, %9 : vector<32x128xf32>
    %11 = arith.truncf %10 : vector<32x128xf32> to vector<32x128xbf16>
    %c0_9 = arith.constant 0 : index
    %c0_10 = arith.constant 0 : index
    %12 = vector.load %arg4[%c0_9, %c0_10] : memref<128x128xbf16, #tpu.memory_space<vmem>>, vector<128x128xbf16>
    %cst_11 = arith.constant dense<0.000000e+00> : vector<32x128xf32>
    %13 = tpu.matmul %11, %12, %cst_11 {dimension_numbers = #tpu.dot_dimension_numbers<[1], [0], [0], [1], [0, 0, 1, 1], [], []>} : vector<32x128xbf16>, vector<128x128xbf16>, vector<32x128xf32> -> vector<32x128xf32>
    %14 = arith.truncf %13 : vector<32x128xf32> to vector<32x128xbf16>
    %cst_12 = arith.constant dense<0.000000e+00> : vector<32x128xf32>
    %15 = tpu.matmul %0, %14, %cst_12 {dimension_numbers = #tpu.dot_dimension_numbers<[1], [0], [0], [1], [0, 0, 1, 1], [], []>} : vector<32x32xbf16>, vector<32x128xbf16>, vector<32x128xf32> -> vector<32x128xf32>
    %c0_13 = arith.constant 0 : index
    %c0_14 = arith.constant 0 : index
    %16 = vector.load %arg5[%c0_13, %c0_14] : memref<1x128xf32, #tpu.memory_space<vmem>>, vector<1x128xf32>
    %17 = vector.broadcast %16 : vector<1x128xf32> to vector<32x128xf32>
    %18 = arith.addf %15, %17 : vector<32x128xf32>
    %c0_15 = arith.constant 0 : index
    %c0_16 = arith.constant 0 : index
    %19 = vector.load %arg6[%c0_15, %c0_16] : memref<32x128xf32, #tpu.memory_space<vmem>>, vector<32x128xf32>
    tpu.vector_store %arg6[%c0_15, %c0_16], %18 {strides = array<i32>} : memref<32x128xf32, #tpu.memory_space<vmem>>, vector<32x128xf32>,
    return
  }
}

</mosaic_0001>

<bundles_post_ra>
// kernel: simple_gcn_forward.1
= control target key start
LH: loop header
LB: loop body
LE: loop exit
PB: predicated region body
PF: predicated region fallthrough
CT: control target
= control target key end

     0   :  { %vm54_vm0 = vcmask 261120   ;;  %s668_s1 = inlined_call_operand.vmem [shape: bf16[32,128], index: 1, kind: input, shape index: {}]   ;;  %s669_s0 = inlined_call_operand.vmem [shape: bf16[32,32], index: 0, kind: input, shape index: {}]   ;;  %s670_s2 = inlined_call_operand.vmem [shape: bf16[128,128], index: 2, kind: input, shape index: {}]   ;;  %s671_s4 = inlined_call_operand.vmem [shape: bf16[128,128], index: 4, kind: input, shape index: {}]   ;;  %s672_s3 = inlined_call_operand.vmem [shape: f32[1,128], index: 3, kind: input, shape index: {}]   ;;  %s673_s5 = inlined_call_operand.vmem [shape: f32[1,128], index: 5, kind: input, shape index: {}]   ;;  %s674_s6 = inlined_call_operand.vmem [shape: f32[32,128], index: 6, kind: output, shape index: {}]  }
   0x1   :  { %v527_v0 = vld [vmem:[%s668_s1] sm:$0xff]   ;;  %v528_v1 = vld [vmem:[%s668_s1 + $0x8] sm:$0xff]   ;;  %v533_v6 = vld [vmem:[%s670_s2 + $0x10] sm:$0xff]  }
   0x2   :  { %471 = vmatprep.subr.bf16.mxu0 %v527_v0  ;;  %v529_v2 = vld [vmem:[%s669_s0] sm:$0xff]   ;;  %v532_v4 = vld [vmem:[%s670_s2 + $0x8] sm:$0xff]   ;;  %v534_v7 = vld [vmem:[%s670_s2 + $0x18] sm:$0xff]  }
   0x3   :  { %472 = vmatpush3.bf16.msra.mxu0 %v527_v0  ;;  %475 = vmatprep.mubr.msk.bf16.mxu0 %vm54_vm0, %v529_v2  ;;  %v531_v3 = vld [vmem:[%s670_s2] sm:$0xff]   ;;  %v601_v5 = vld [vmem:[%s669_s0 + $0x8] sm:$0xff]   ;;  %v537_v10 = vld [vmem:[%s670_s2 + $0x30] sm:$0xff]  }
   0x4   :  { %473 = vmatprep.subr.bf16.mxu0 %v528_v1  ;;  %479 = vmatprep.subr.bf16.mxu1 %v531_v3  ;;  %v535_v8 = vld [vmem:[%s670_s2 + $0x20] sm:$0xff]   ;;  %v536_v9 = vld [vmem:[%s670_s2 + $0x28] sm:$0xff]   ;;  %v538_v11 = vld [vmem:[%s670_s2 + $0x38] sm:$0xff]  }
   0x5   :  { %480 = vmatpush3.bf16.msra.mxu1 %v531_v3  ;;  %v539_v12 = vld [vmem:[%s671_s4] sm:$0xff]   ;;  %v540_v13 = vld [vmem:[%s671_s4 + $0x8] sm:$0xff]   ;;  %v541_v14 = vld [vmem:[%s671_s4 + $0x10] sm:$0xff]  }
   0x6   :  { %481 = vmatprep.subr.bf16.mxu1 %v532_v4  ;;  %v542_v15 = vld [vmem:[%s671_s4 + $0x18] sm:$0xff]   ;;  %v543_v16 = vld [vmem:[%s671_s4 + $0x20] sm:$0xff]   ;;  %v544_v17 = vld [vmem:[%s671_s4 + $0x28] sm:$0xff]  }
   0x7   :  { %474 = vmatpush3.bf16.msra.mxu0 %v528_v1  ;;  %v545_v24 = vld [vmem:[%s671_s4 + $0x30] sm:$0xff]   ;;  %v546_v25 = vld [vmem:[%s671_s4 + $0x38] sm:$0xff]   ;;  %v423_v26 = vld [vmem:[%s672_s3] ss:$0 sm:$0xff] }
   0x8   :  { %499 = vmatprep.subr.bf16.mxu0 %v539_v12  ;;  %v440_v47 = vld [vmem:[%s673_s5] ss:$0 sm:$0xff] }
   0x9   :  { %482 = vmatpush3.bf16.msra.mxu1 %v532_v4 }
   0xa   :  { %476 = vmatmul.mubr.msk.bf16.vlgmr.msra.gmra.mrb[0].mxu0 %vm54_vm0, %v601_v5  ;;  %483 = vmatprep.subr.bf16.mxu1 %v533_v6 }
   0xb   :  { %500 = vmatpush3.bf16.msra.mxu0 %v539_v12 }
   0xc   :  { %501 = vmatprep.subr.bf16.mxu0 %v540_v13 }
   0xd   :  { %484 = vmatpush3.bf16.msra.mxu1 %v533_v6 }
   0xe   :  { %485 = vmatprep.subr.bf16.mxu1 %v534_v7 }
   0xf   :  { %502 = vmatpush3.bf16.msra.mxu0 %v540_v13 }
  0x10   :  { %503 = vmatprep.subr.bf16.mxu0 %v541_v14 }
  0x11   :  { %486 = vmatpush3.bf16.msra.mxu1 %v534_v7 }
  0x12   :  { %487 = vmatprep.subr.bf16.mxu1 %v535_v8 }
  0x13   :  { %504 = vmatpush3.bf16.msra.mxu0 %v541_v14 }
  0x14   :  { %505 = vmatprep.subr.bf16.mxu0 %v542_v15 }
  0x15   :  { %488 = vmatpush3.bf16.msra.mxu1 %v535_v8 }
  0x16   :  { %489 = vmatprep.subr.bf16.mxu1 %v536_v9 }
  0x17   :  { %506 = vmatpush3.bf16.msra.mxu0 %v542_v15 }
  0x18   :  { %507 = vmatprep.subr.bf16.mxu0 %v543_v16 }
  0x19   :  { %490 = vmatpush3.bf16.msra.mxu1 %v536_v9 }
  0x1a   :  { %491 = vmatprep.subr.bf16.mxu1 %v537_v10 }
  0x1b   :  { %508 = vmatpush3.bf16.msra.mxu0 %v543_v16 }
  0x1c   :  { %509 = vmatprep.subr.bf16.mxu0 %v544_v17 }
  0x1d   :  { %492 = vmatpush3.bf16.msra.mxu1 %v537_v10 }
  0x1e   :  { %493 = vmatprep.subr.bf16.mxu1 %v538_v11 }
  0x1f   :  { %510 = vmatpush3.bf16.msra.mxu0 %v544_v17 }
  0x20   :  { %511 = vmatprep.subr.bf16.mxu0 %v545_v24 }
  0x21   :  { %494 = vmatpush3.bf16.msra.mxu1 %v538_v11 }
  0x23   :  { %512 = vmatpush3.bf16.msra.mxu0 %v545_v24 }
  0x24   :  { %513 = vmatprep.subr.bf16.mxu0 %v546_v25 }
  0x27   :  { %514 = vmatpush3.bf16.msra.mxu0 %v546_v25 }
  0xdd   :  { %v477_v18 = vpop.f32.mrb[0].mxu0 }
  0xde   :  { %v95_v19 = vpop.f32.mrb[1].mxu0 }
  0xdf   :  { %v478_v20 = vpop.f32.mrb[2].mxu0 }
  0xe0   :  { %v111_v21 = vpack.c.bf16 %v478_v20, %v477_v18  ;;  %v98_v22 = vpop.f32.mrb[3].mxu0 }
  0xe1   :  { %v110_v23 = vpack.c.bf16 %v98_v22, %v95_v19 }
  0xe3   :  { %495 = vmatprep.mubr.bf16.mxu1 %v110_v23 }
  0xe4   :  { %496 = vmatmul.mubr.bf16.vlgmr.msra.gmra.mrb[0].mxu1 %v111_v21 }
  0xe5   :  { %523 = vmatprep.mubr.msk.bf16.mxu1 %vm54_vm0, %v529_v2 }
 0x1b7   :  { %v497_v27 = vpop.f32.mrb[0].mxu1 }
 0x1b8   :  { %v226_v28 = vadd.f32 %v497_v27, %v423_v26  ;;  %v217_v29 = vpop.f32.mrb[1].mxu1 }
 0x1b9   :  { %v218_v30 = vadd.f32 %v423_v26, %v217_v29  ;;  %v498_v31 = vpop.f32.mrb[2].mxu1 }
 0x1ba   :  { %v229_v32 = vadd.f32 %v498_v31, %v423_v26  ;;  %v220_v33 = vpop.f32.mrb[3].mxu1  ;;  %v234_v35 = vmax.f32 %v226_v28, 0.0 }
 0x1bb   :  { %v221_v34 = vadd.f32 %v423_v26, %v220_v33  ;;  %v232_v37 = vmax.f32 %v218_v30, 0.0 }
 0x1bc   :  { %v235_v36 = vmax.f32 %v229_v32, 0.0 }
 0x1bd   :  { %v233_v38 = vmax.f32 %v221_v34, 0.0 }
 0x1be   :  { %v237_v39 = vpack.c.bf16 %v235_v36, %v234_v35 }
 0x1bf   :  { %v236_v40 = vpack.c.bf16 %v233_v38, %v232_v37 }
 0x1c1   :  { %515 = vmatprep.mubr.bf16.mxu0 %v236_v40 }
 0x1c2   :  { %516 = vmatmul.mubr.bf16.vlgmr.msra.gmra.mrb[4].mxu0 %v237_v39 }
 0x295   :  { %v517_v41 = vpop.f32.mrb[4].mxu0 }
 0x296   :  { %v336_v42 = vpop.f32.mrb[5].mxu0 }
 0x297   :  { %v518_v43 = vpop.f32.mrb[6].mxu0 }
 0x298   :  { %v352_v44 = vpack.c.bf16 %v518_v43, %v517_v41  ;;  %v339_v45 = vpop.f32.mrb[7].mxu0 }
 0x299   :  { %v351_v46 = vpack.c.bf16 %v339_v45, %v336_v42 }
 0x29b   :  { %519 = vmatprep.subr.bf16.mxu1 %v351_v46 }
 0x29c   :  { %520 = vmatpush3.bf16.msra.mxu1 %v351_v46 }
 0x29d   :  { %521 = vmatprep.subr.bf16.mxu1 %v352_v44 }
 0x2a0   :  { %522 = vmatpush3.bf16.msra.mxu1 %v352_v44 }
 0x2a3   :  { %524 = vmatmul.mubr.msk.bf16.vlgmr.msra.gmra.mrb[4].mxu1 %vm54_vm0, %v601_v5 }
 0x376   :  { %v525_v48 = vpop.f32.mrb[4].mxu1 }
 0x377   :  { %v403_v49 = vadd.f32 %v525_v48, %v440_v47  ;;  %v394_v50 = vpop.f32.mrb[5].mxu1 }
 0x378   :  { %v395_v51 = vadd.f32 %v440_v47, %v394_v50  ;;  %v526_v52 = vpop.f32.mrb[6].mxu1 }
 0x379   :  { %411 = vst [vmem:[%s674_s6 + $0x10] sm:$0xff] %v403_v49  ;;  %v406_v53 = vadd.f32 %v526_v52, %v440_v47  ;;  %v397_v54 = vpop.f32.mrb[7].mxu1 }
 0x37a   :  { %409 = vst [vmem:[%s674_s6] sm:$0xff] %v395_v51  ;;  %v398_v55 = vadd.f32 %v440_v47, %v397_v54 }
 0x37b   :  { %412 = vst [vmem:[%s674_s6 + $0x18] sm:$0xff] %v406_v53 }
 0x37c   :  { %410 = vst [vmem:[%s674_s6 + $0x8] sm:$0xff] %v398_v55 }

</bundles_post_ra>
